<compile_context>
chip_gen: v7x
topology: tpu7x:2x2x1
jax: 0.10.0
libtpu: 0.0.40
codegen_flags: <defaults>
</compile_context>

<pallas_src>
import jax
import jax.numpy as jnp
from jax.experimental import pallas as pl
from jax.experimental.pallas import tpu as pltpu


def moe_loader_kernel(x_ref, wt_ref, pos_ref, cls_ref, o_ref):
    """One chunk of G flattened (b, e) pairs:
       x_ref   : (G, N, F)    input patches
       wt_ref  : (F, D)       Linear weight transposed
       pos_ref : (N, D)       pos_emb[1:] + bias      (grid-invariant, pre-fused)
       cls_ref : (1, D)       cls_token + pos_emb[0]  (grid-invariant, pre-fused)
       o_ref   : (G, N+1, D)  output: row 0 = cls row, rows 1..N = patches
    """
    G, N, F = x_ref.shape
    D = wt_ref.shape[1]

    # Tall-M matmul on the MXU: (G*N, F) @ (F, D).  N is a multiple of 8 so the
    # leading-dim collapse/split is layout-trivial.
    x = x_ref[...].reshape(G * N, F)
    proj = jnp.dot(x, wt_ref[...], preferred_element_type=jnp.float32)   # (G*N, D)
    proj = proj.reshape(G, N, D) + pos_ref[...][None, :, :]              # bias+pos fused

    cls_rows = jnp.broadcast_to(cls_ref[...].reshape(1, 1, D), (G, 1, D))

    # Single contiguous store of the whole (G, N+1, D) tile.
    o_ref[...] = jnp.concatenate([cls_rows, proj], axis=1).astype(o_ref.dtype)


def _chunk_size(M, N, target_rows=2048):
    """Largest divisor g of M with g*N <= target_rows; when M > 1, also keep at
    least 2 grid steps so the 'parallel' axis can shard across v7x's 2 TCs."""
    limit = max(1, target_rows // max(N, 1))
    if M > 1:
        limit = min(limit, max(1, M // 2))
    best = 1
    for g in range(1, min(M, limit) + 1):
        if M % g == 0:
            best = g
    return best


def moe_loader_forward(x, w, b, cls_token, pos_emb):
    """x: (B, E, N, F) float32
       w: (D, F) Linear weight, b: (D,) bias
       cls_token: (1, 1, 1, D), pos_emb: (1, 1, N+1, D)
       returns (out (B, E, N+1, D) float32, mask (B, E) int32)"""
    B, E, N, F = x.shape
    D = w.shape[0]
    M = B * E

    # Wrapper-side glue: flatten (B, E) and pre-fuse grid-invariant constants.
    x_flat = x.reshape(M, N, F).astype(jnp.float32)
    wt = jnp.asarray(w.T, dtype=jnp.float32)                          # (F, D)
    pos = pos_emb.reshape(N + 1, D).astype(jnp.float32)
    pos_patch = pos[1:, :] + b.reshape(1, D).astype(jnp.float32)      # (N, D), bias folded
    cls_fused = cls_token.reshape(1, D).astype(jnp.float32) + pos[0:1, :]  # (1, D)

    G = _chunk_size(M, N)
    grid = (M // G,)

    out_flat = pl.pallas_call(
        moe_loader_kernel,
        out_shape=jax.ShapeDtypeStruct((M, N + 1, D), jnp.float32),
        grid_spec=pl.GridSpec(
            grid=grid,
            in_specs=[
                pl.BlockSpec((G, N, F), lambda i: (i, 0, 0)),
                pl.BlockSpec((F, D), lambda i: (0, 0)),
                pl.BlockSpec((N, D), lambda i: (0, 0)),
                pl.BlockSpec((1, D), lambda i: (0, 0)),
            ],
            out_specs=pl.BlockSpec((G, N + 1, D), lambda i: (i, 0, 0)),
        ),
        compiler_params=pltpu.CompilerParams(
            dimension_semantics=("parallel",)),
    )(x_flat, wt, pos_patch, cls_fused)

    out = out_flat.reshape(B, E, N + 1, D)

    # x_mask = torch.ones(B, E).long()
    # TODO(synk): torch uses int64 ('long'); int32 under default JAX x32 mode.
    x_mask = jnp.ones((B, E), dtype=jnp.int32)
    return out, x_mask


def _reference(x, w, b, cls_token, pos_emb):
    B, E, N, F = x.shape
    D = w.shape[0]
    proj = jnp.einsum("benf,df->bend", x, w) + b                      # Linear
    cls_rep = jnp.broadcast_to(cls_token, (B, E, 1, D))               # repeat
    cat = jnp.concatenate([cls_rep, proj], axis=-2)                   # front append
    return cat + pos_emb                                              # pos emb


if __name__ == "__main__":
    # small shapes consistent with the module (n_patches=8, inner_dim=32, freq F=129)
    B, E, N, F, D = 2, 3, 8, 129, 32

    key = jax.random.PRNGKey(0)
    kx, kw, kb, kc, kp = jax.random.split(key, 5)

    x = jax.random.normal(kx, (B, E, N, F), dtype=jnp.float32)

    # nn.Linear(129, D) default init: U(-1/sqrt(F), 1/sqrt(F))
    bound = 1.0 / jnp.sqrt(jnp.float32(F))
    w = jax.random.uniform(kw, (D, F), minval=-bound, maxval=bound, dtype=jnp.float32)
    b = jax.random.uniform(kb, (D,), minval=-bound, maxval=bound, dtype=jnp.float32)

    # trunc_normal_(std=0.02) for cls token and positional embedding
    cls_token = 0.02 * jax.random.truncated_normal(kc, -2.0, 2.0, (1, 1, 1, D), dtype=jnp.float32)
    pos_emb = 0.02 * jax.random.truncated_normal(kp, -2.0, 2.0, (1, 1, N + 1, D), dtype=jnp.float32)

    out, mask = moe_loader_forward(x, w, b, cls_token, pos_emb)
    out = jax.block_until_ready(out)
    mask = jax.block_until_ready(mask)

    ref = _reference(x, w, b, cls_token, pos_emb)
    assert out.shape == (B, E, N + 1, D)
    assert mask.shape == (B, E) and mask.dtype == jnp.int32
    assert jnp.allclose(out, ref, atol=1e-5, rtol=1e-5)

    print("KERNEL_OK")
</pallas_src>

<mosaic_0001>
module attributes {stable_mosaic.version = 11 : i64} {
  func.func @moe_loader_kernel(%arg0: i32, %arg1: memref<3x8x129xf32, #tpu.memory_space<vmem>>, %arg2: memref<129x32xf32, #tpu.memory_space<vmem>>, %arg3: memref<8x32xf32, #tpu.memory_space<vmem>>, %arg4: memref<1x32xf32, #tpu.memory_space<vmem>>, %arg5: memref<3x9x32xf32, #tpu.memory_space<vmem>>) attributes {dimension_semantics = [#tpu.dimension_semantics<parallel>], iteration_bounds = array<i64: 2>, scalar_prefetch = 0 : i64, scratch_operands = 0 : i64, tpu.core_type = #tpu.core_type<tc>, window_params = [{transform_indices = @transform_0, window_bounds = array<i64: 3, 8, 129>}, {pipeline_mode = #tpu.pipeline_mode<synchronous>, transform_indices = @transform_1, window_bounds = array<i64: 129, 32>}, {pipeline_mode = #tpu.pipeline_mode<synchronous>, transform_indices = @transform_2, window_bounds = array<i64: 8, 32>}, {pipeline_mode = #tpu.pipeline_mode<synchronous>, transform_indices = @transform_3, window_bounds = array<i64: 1, 32>}, {transform_indices = @transform_4, window_bounds = array<i64: 3, 9, 32>}]} {
    %c0 = arith.constant 0 : index
    %c0_0 = arith.constant 0 : index
    %c0_1 = arith.constant 0 : index
    %0 = vector.load %arg1[%c0, %c0_0, %c0_1] : memref<3x8x129xf32, #tpu.memory_space<vmem>>, vector<3x8x129xf32>
    %1 = vector.shape_cast %0 : vector<3x8x129xf32> to vector<24x129xf32>
    %c0_2 = arith.constant 0 : index
    %c0_3 = arith.constant 0 : index
    %2 = vector.load %arg2[%c0_2, %c0_3] : memref<129x32xf32, #tpu.memory_space<vmem>>, vector<129x32xf32>
    %cst = arith.constant dense<0.000000e+00> : vector<24x32xf32>
    %3 = tpu.matmul %1, %2, %cst {dimension_numbers = #tpu.dot_dimension_numbers<[1], [0], [0], [1], [0, 0, 1, 1], [], []>} : vector<24x129xf32>, vector<129x32xf32>, vector<24x32xf32> -> vector<24x32xf32>
    %4 = vector.shape_cast %3 : vector<24x32xf32> to vector<3x8x32xf32>
    %c0_4 = arith.constant 0 : index
    %c0_5 = arith.constant 0 : index
    %5 = vector.load %arg3[%c0_4, %c0_5] : memref<8x32xf32, #tpu.memory_space<vmem>>, vector<8x32xf32>
    %6 = vector.shape_cast %5 : vector<8x32xf32> to vector<1x8x32xf32>
    %7 = vector.broadcast %6 : vector<1x8x32xf32> to vector<3x8x32xf32>
    %8 = arith.addf %4, %7 : vector<3x8x32xf32>
    %c0_6 = arith.constant 0 : index
    %c0_7 = arith.constant 0 : index
    %9 = vector.load %arg4[%c0_6, %c0_7] : memref<1x32xf32, #tpu.memory_space<vmem>>, vector<1x32xf32>
    %10 = vector.shape_cast %9 : vector<1x32xf32> to vector<1x1x32xf32>
    %11 = vector.shape_cast %10 : vector<1x1x32xf32> to vector<1x1x32xf32>
    %12 = vector.broadcast %11 : vector<1x1x32xf32> to vector<3x1x32xf32>
    %13 = tpu.concatenate %12, %8 in 1 : vector<3x1x32xf32>, vector<3x8x32xf32> -> vector<3x9x32xf32>
    %c0_8 = arith.constant 0 : index
    %c0_9 = arith.constant 0 : index
    %c0_10 = arith.constant 0 : index
    %14 = vector.load %arg5[%c0_8, %c0_9, %c0_10] : memref<3x9x32xf32, #tpu.memory_space<vmem>>, vector<3x9x32xf32>
    tpu.vector_store %arg5[%c0_8, %c0_9, %c0_10], %13 {strides = array<i32>} : memref<3x9x32xf32, #tpu.memory_space<vmem>>, vector<3x9x32xf32>,
    return
  }
  func.func @transform_0(%arg0: i32) -> (i32, i32, i32) {
    %c0_i32 = arith.constant 0 : i32
    %c0_i32_0 = arith.constant 0 : i32
    %c0_i32_1 = arith.constant 0 : i32
    return %arg0, %c0_i32, %c0_i32_0 : i32, i32, i32
  }
  func.func @transform_1(%arg0: i32) -> (i32, i32) {
    %c0_i32 = arith.constant 0 : i32
    %c0_i32_0 = arith.constant 0 : i32
    %c0_i32_1 = arith.constant 0 : i32
    return %c0_i32, %c0_i32_0 : i32, i32
  }
  func.func @transform_2(%arg0: i32) -> (i32, i32) {
    %c0_i32 = arith.constant 0 : i32
    %c0_i32_0 = arith.constant 0 : i32
    %c0_i32_1 = arith.constant 0 : i32
    return %c0_i32, %c0_i32_0 : i32, i32
  }
  func.func @transform_3(%arg0: i32) -> (i32, i32) {
    %c0_i32 = arith.constant 0 : i32
    %c0_i32_0 = arith.constant 0 : i32
    %c0_i32_1 = arith.constant 0 : i32
    return %c0_i32, %c0_i32_0 : i32, i32
  }
  func.func @transform_4(%arg0: i32) -> (i32, i32, i32) {
    %c0_i32 = arith.constant 0 : i32
    %c0_i32_0 = arith.constant 0 : i32
    %c0_i32_1 = arith.constant 0 : i32
    return %arg0, %c0_i32, %c0_i32_0 : i32, i32, i32
  }
}

</mosaic_0001>

<bundles_post_ra>
// kernel: tpu_custom_call.1
= control target key start
LH: loop header
LB: loop body
LE: loop exit
PB: predicated region body
PF: predicated region fallthrough
CT: control target
= control target key end

     0   :  { %s510_s15 = smov 0   ;;  %s607_s0 = inlined_call_operand.vmem [shape: f32[6,8,129], index: 0, kind: input, shape index: {}]   ;;  %s608_s1 = inlined_call_operand.vmem [shape: f32[129,32], index: 1, kind: input, shape index: {}]   ;;  %s609_s2 = inlined_call_operand.vmem [shape: f32[8,32], index: 2, kind: input, shape index: {}]   ;;  %s610_s3 = inlined_call_operand.vmem [shape: f32[1,32], index: 3, kind: input, shape index: {}]   ;;  %s611_s4 = inlined_call_operand.vmem [shape: f32[6,9,32], index: 4, kind: output, shape index: {}]  }
   0x1 LB: > { %s406_s16 = sadd.s32 4294967295, %s481_s15   ;;  %p410_p0 = scmp.ge.s32.totalorder %s481_s15, 1  ;;  %s481_s15 = sphi %s510_s15, %s14_s15  }
   0x2   : > { %p164_p1 = scmp.lt.s32.totalorder %s481_s15, 3 }
   0x4   : > { %p165_p2 = pnand %p410_p0, %p164_p1 }
   0x5   : > { %v212_v0 = vld [vmem:[%s608_s1] sm:$0xff] (!%p165_p2)  ;;  %v213_v1 = vld [vmem:[%s608_s1 + $0x8] sm:$0xff] (!%p165_p2)  ;;  %v214_v2 = vld [vmem:[%s608_s1 + $0x10] sm:$0xff] (!%p165_p2)  ;;  %v483_v3 = vmov (!%p165_p2), 0.0|0.0   ;;  %s192_s25 = smul.u32 (!%p165_p2), 3, %s406_s16  ;;  %vm229_vm0 = vcmask (!%p165_p2), 7168  }
   0x6   : > { %168 = sbr.rel (%p165_p2) target bundleno = 263 (0x107), region = 36  ;;  %447 = vmatprep.subr.bf16.mxu1 (!%p165_p2), %v483_v3  ;;  %v424_v4 = vpack.c.bf16 (!%p165_p2), %v213_v1, %v212_v0  ;;  %423 = vmatprep.subr.bf16.mxu0 (!%p165_p2), %v483_v3  ;;  %v215_v5 = vld [vmem:[%s608_s1 + $0x18] sm:$0xff] (!%p165_p2)  ;;  %v216_v7 = vld [vmem:[%s608_s1 + $0x20] sm:$0xff] (!%p165_p2)  ;;  %v217_v8 = vld [vmem:[%s608_s1 + $0x28] sm:$0xff] (!%p165_p2)  ;;  %v484_v27 = vmov (!%p165_p2), 0.0   ;;  %vm239_vm1 = vcmask (!%p165_p2), 1040384  }
   0x7   : > { %v427_v6 = vpack.c.bf16 (!%p165_p2), %v215_v5, %v214_v2  ;;  %p193_p3 = scmp.lt.s32.totalorder (!%p165_p2), %s192_s25, 5  ;;  %v430_v9 = vpack.c.bf16 (!%p165_p2), %v217_v8, %v216_v7  ;;  %v218_v10 = vld [vmem:[%s608_s1 + $0x30] sm:$0xff] (!%p165_p2)  ;;  %v219_v11 = vld [vmem:[%s608_s1 + $0x38] sm:$0xff] (!%p165_p2)  ;;  %v220_v15 = vld [vmem:[%s608_s1 + $0x40] sm:$0xff] (!%p165_p2)  ;;  %vm342_vm2 = vcmask (!%p165_p2), 253952   ;;  %vm340_vm3 = vcmask (!%p165_p2), 261120  }
   0x8   : > { %456 = vmatpush1.bf16.msra.mxu1 (!%p165_p2), %v424_v4  ;;  %425 = vmatpush1.bf16.msra.mxu0 (!%p165_p2), %v424_v4  ;;  %v433_v14 = vpack.c.bf16 (!%p165_p2), %v219_v11, %v218_v10  ;;  %v221_v16 = vld [vmem:[%s608_s1 + $0x48] sm:$0xff] (!%p165_p2)  ;;  %v222_v18 = vld [vmem:[%s608_s1 + $0x50] sm:$0xff] (!%p165_p2)  ;;  %v223_v19 = vld [vmem:[%s608_s1 + $0x58] sm:$0xff] (!%p165_p2) }
   0x9   : > { %448 = vmatprep.subr.bf16.mxu1 (!%p165_p2), %v483_v3  ;;  %426 = vmatprep.subr.bf16.mxu0 (!%p165_p2), %v483_v3  ;;  %v436_v17 = vpack.c.bf16 (!%p165_p2), %v221_v16, %v220_v15  ;;  %v439_v20 = vpack.c.bf16 (!%p165_p2), %v223_v19, %v222_v18  ;;  %v224_v21 = vld [vmem:[%s608_s1 + $0x60] sm:$0xff] (!%p165_p2)  ;;  %v225_v22 = vld [vmem:[%s608_s1 + $0x68] sm:$0xff] (!%p165_p2)  ;;  %v226_v24 = vld [vmem:[%s608_s1 + $0x70] sm:$0xff] (!%p165_p2) }
   0xa   : > { %v442_v23 = vpack.c.bf16 (!%p165_p2), %v225_v22, %v224_v21  ;;  %v227_v25 = vld [vmem:[%s608_s1 + $0x78] sm:$0xff] (!%p165_p2)  ;;  %v228_v28 = vld [vmem:[%s608_s1 + $0x80] sm:$0x1] (!%p165_p2) }
   0xb   : > { %v445_v26 = vpack.c.bf16 (!%p165_p2), %v227_v25, %v226_v24  ;;  %v323_v33 = vld [vmem:[%s609_s2] sm:$0xff] (!%p165_p2) }
   0xc   : > { %457 = vmatpush1.bf16.msra.mxu1 (!%p165_p2), %v427_v6  ;;  %428 = vmatpush1.bf16.msra.mxu0 (!%p165_p2), %v427_v6  ;;  %v327_v40 = vld [vmem:[%s610_s3] sm:$0x1] (!%p165_p2) }
   0xd   : > { %s613_s25 = smov (!%p193_p3, %s192_s25), 5  ;;  %449 = vmatprep.subr.bf16.mxu1 %v483_v3  ;;  %429 = vmatprep.subr.bf16.mxu0 %v483_v3 }
   0xe   : > { %s421_s30 = sshll.u32 %s613_s25, 4 }
   0xf   : > { %s550_s11 = scalar_lea.vmem %s607_s0, %s421_s30  ;;  %s204_s12 = scalar_lea.vmem %s611_s4, %s421_s30 }
  0x10   : > { %v209_v12 = vld [vmem:[%s550_s11 + $0x18] sm:$0xff]  ;;  %v207_v13 = vld [vmem:[%s550_s11 + $0x8] sm:$0xff]  ;;  %458 = vmatpush1.bf16.msra.mxu1 %v430_v9  ;;  %431 = vmatpush1.bf16.msra.mxu0 %v430_v9  ;;  %v208_v29 = vld [vmem:[%s550_s11 + $0x10] sm:$0xff] }
  0x11   : > { %417 = vmatprep.mubr.msk.f32.mxu1 %vm229_vm0, %v209_v12  ;;  %416 = vmatprep.mubr.msk.f32.mxu0 %vm229_vm0, %v207_v13  ;;  %v206_v30 = vld [vmem:[%s550_s11] sm:$0xff]  ;;  %v211_v31 = vld [vmem:[%s550_s11 + $0x28] sm:$0xff] }
  0x12   : > { %450 = vmatprep.subr.bf16.mxu1 %v483_v3  ;;  %432 = vmatprep.subr.bf16.mxu0 %v483_v3  ;;  %v210_v32 = vld [vmem:[%s550_s11 + $0x20] sm:$0xff] }
  0x14   : > { %459 = vmatpush1.bf16.msra.mxu1 %v433_v14  ;;  %434 = vmatpush1.bf16.msra.mxu0 %v433_v14 }
  0x15   : > { %451 = vmatprep.subr.bf16.mxu1 %v483_v3  ;;  %435 = vmatprep.subr.bf16.mxu0 %v483_v3 }
  0x18   : > { %460 = vmatpush1.bf16.msra.mxu1 %v436_v17  ;;  %437 = vmatpush1.bf16.msra.mxu0 %v436_v17 }
  0x19   : > { %452 = vmatprep.subr.bf16.mxu1 %v483_v3  ;;  %438 = vmatprep.subr.bf16.mxu0 %v483_v3 }
  0x1c   : > { %461 = vmatpush1.bf16.msra.mxu1 %v439_v20  ;;  %440 = vmatpush1.bf16.msra.mxu0 %v439_v20 }
  0x1d   : > { %453 = vmatprep.subr.bf16.mxu1 %v483_v3  ;;  %441 = vmatprep.subr.bf16.mxu0 %v483_v3 }
  0x20   : > { %462 = vmatpush1.bf16.msra.mxu1 %v442_v23  ;;  %443 = vmatpush1.bf16.msra.mxu0 %v442_v23 }
  0x21   : > { %454 = vmatprep.subr.bf16.mxu1 %v483_v3  ;;  %444 = vmatprep.subr.bf16.mxu0 %v483_v3 }
  0x24   : > { %463 = vmatpush1.bf16.msra.mxu1 %v445_v26  ;;  %446 = vmatpush1.bf16.msra.mxu0 %v445_v26 }
  0x25   : > { %455 = vmatprep.subr.mxu1 %v484_v27  ;;  %275 = vmatprep.subr.mxu0 %v484_v27 }
  0x28   : > { %464 = vmatpush1.msk.msra.mxu1 %vm239_vm1, %v228_v28  ;;  %415 = vmatpush1.msk.msra.mxu0 %vm239_vm1, %v228_v28 }
  0x29   : > { %313 = vmatmul.mubr.f32.vlgmr.msra.gmra.mrb[0].mxu1 %v208_v29  ;;  %308 = vmatmul.mubr.f32.vlgmr.msra.gmra.mrb[0].mxu0 %v206_v30 }
  0x2a   : > { %418 = vmatprep.mubr.msk.f32.mxu1 %vm229_vm0, %v211_v31 }
  0x2d   : > { %318 = vmatmul.mubr.f32.gmra.mrb[2].mxu1 %v210_v32 }
  0xfc   : > { %v314_v34 = vpop.f32.mrb[0].mxu1  ;;  %v309_v35 = vpop.f32.mrb[0].mxu0 }
  0xfd   : > { %v325_v36 = vadd.f32 %v323_v33, %v314_v34  ;;  %v316_v37 = vpop.f32.mrb[1].mxu1  ;;  %v324_v38 = vadd.f32 %v323_v33, %v309_v35  ;;  %v311_v39 = vpop.f32.mrb[1].mxu0 }
  0xff   : > { %v332_v41 = vrot.slane %v325_v36, 7  ;;  %v331_v42 = vrot.slane %v324_v38, 7 }
 0x100   : > { %v319_v43 = vpop.f32.mrb[2].mxu1 }
 0x101   : > { %v338_v44 = vsel %vm239_vm1, %v327_v40, %v332_v41  ;;  %345 = vst.msk [vmem:[%s204_s12 + $0x18] sm:$0x1] %vm342_vm2, %v332_v41  ;;  %v337_v45 = vsel %vm239_vm1, %v327_v40, %v331_v42  ;;  %343 = vst.msk [vmem:[%s204_s12 + $0x8] sm:$0x1] %vm342_vm2, %v331_v42  ;;  %v326_v46 = vadd.f32 %v323_v33, %v319_v43  ;;  %v321_v47 = vpop.f32.mrb[3].mxu1 }
 0x102   : > { %344 = vst.msk [vmem:[%s204_s12 + $0x10] sm:$0xff] %vm340_vm3, %v338_v44  ;;  %341 = vst.msk [vmem:[%s204_s12] sm:$0xff] %vm340_vm3, %v337_v45 }
 0x103   : > { %v333_v48 = vrot.slane %v326_v46, 7 }
 0x105   : > { %v339_v49 = vsel %vm239_vm1, %v327_v40, %v333_v48  ;;  %347 = vst.msk [vmem:[%s204_s12 + $0x28] sm:$0x1] %vm342_vm2, %v333_v48 }
 0x106   : > { %346 = vst.msk [vmem:[%s204_s12 + $0x20] sm:$0xff] %vm340_vm3, %v339_v49 }
 0x107 PF: > { %s14_s15 = sadd.s32 1, %s481_s15  }
 0x108   : > { %p11_p4 = scmp.ge.s32.totalorder %s14_s15, 4  }
 0x10a   :  { %13 = sbr.rel (!%p11_p4) target bundleno = 1 (0x1), region = 66 }

</bundles_post_ra>
